<compile_context>
chip_gen: v7x
topology: tpu7x:2x2x1
jax: 0.10.0
libtpu: 0.0.40
codegen_flags: <defaults>
</compile_context>

<pallas_src>
import functools

import jax
import jax.numpy as jnp
from jax.experimental import pallas as pl
from jax.experimental.pallas import tpu as pltpu


# --------------------------------------------------------------------------
# Kernel
# --------------------------------------------------------------------------
def rope_kernel(x_ref, cos_ref, sin_ref, o_ref):
    x = x_ref[...].astype(jnp.float32)            # (Gt, Wt)
    w = x.shape[-1]
    # Neighbour values via lane rotation (XLU slot, hidden under DMA).
    nxt = pltpu.roll(x, shift=w - 1, axis=1)      # x[j+1] placed at lane j
    prv = pltpu.roll(x, shift=1, axis=1)          # x[j-1] placed at lane j
    # Tile lane parity == global parity: every tile starts at an even global
    # lane offset (tile widths are multiples of 128).  Wrap-around lanes of
    # the rolls are never selected (lane 0 is even -> takes nxt, last lane is
    # odd -> takes prv).
    lane = jax.lax.broadcasted_iota(jnp.int32, x.shape, 1)
    x_swap = jnp.where((lane & 1) == 0, nxt, prv)
    # sin_ref already carries the sign: -sin on even lanes, +sin on odd.
    o_ref[...] = (x * cos_ref[...] + x_swap * sin_ref[...]).astype(o_ref.dtype)


# --------------------------------------------------------------------------
# Cache construction (hoisted out of the per-call path)
# --------------------------------------------------------------------------
@functools.lru_cache(maxsize=32)
def _rope_caches(T: int, d: int, base: int):
    """f32 cos and sign-folded sin caches, flattened to (1, T*d)."""
    pos = jnp.arange(1, T + 1, dtype=jnp.float32)                 # (T,)
    dim = jnp.arange(d // 2, dtype=jnp.float32)                   # (d/2,)
    theta = jnp.float32(base) ** (-2.0 * (dim - 1.0) / d)         # (d/2,)
    pos_theta = pos[:, None] * theta[None, :]                     # (T, d/2)
    cos = jnp.concatenate([jnp.cos(pos_theta)] * 2, axis=-1)      # (T, d)
    sin = jnp.concatenate([jnp.sin(pos_theta)] * 2, axis=-1)      # (T, d)
    even = (jnp.arange(d) % 2) == 0                               # (d,)
    sin_signed = jnp.where(even[None, :], -sin, sin)              # (T, d)
    return cos.reshape(1, T * d), sin_signed.reshape(1, T * d)


# --------------------------------------------------------------------------
# Tile selection
# --------------------------------------------------------------------------
def _largest_divisor(n, limit, multiple_of=1):
    """Largest divisor of n that is <= limit and a multiple of `multiple_of`."""
    limit = min(limit, n)
    for c in range(limit, 0, -1):
        if n % c == 0 and c % multiple_of == 0:
            return c
    return None


def _vmem_budget_bytes():
    """Generation-aware VMEM budget (leave headroom below physical)."""
    phys = 64 << 20                               # conservative (v7x per-TC)
    try:
        info = pltpu.get_tpu_info()
        phys = int(getattr(info, "vmem_capacity_bytes", phys))
    except Exception:
        pass
    # ~60% of physical, capped: 76.8 MiB on v5e/v6e (128 MiB), 38.4 MiB v7x.
    return min(int(phys * 6 // 10), 96 << 20)


def _pick_tiles(G, W, itemsize, x_tile_budget, row_multiple):
    """Pick (row_tile, lane_tile). Caller guarantees W % 128 == 0."""
    # Lane tile: divisor of W, multiple of 128, one row-tile within budget.
    max_wt = max(128, x_tile_budget // (row_multiple * itemsize))
    wt = _largest_divisor(W, max(128, min(W, max_wt)), 128) or W
    # Row tile: fill the per-step budget; multiple of row_multiple (or full G).
    target_rows = max(row_multiple, x_tile_budget // (wt * itemsize))
    gt = None
    if G % row_multiple == 0:
        gt = _largest_divisor(G, min(G, target_rows), row_multiple)
    if gt is None:
        gt = G
    # Megacore (v7x): make sure there are >= 2 grid blocks when possible.
    if (G // gt) * (W // wt) < 2:
        if gt % (2 * row_multiple) == 0:
            gt //= 2
        elif wt % 256 == 0:
            wt //= 2
    return gt, wt


# --------------------------------------------------------------------------
# Wrapper
# --------------------------------------------------------------------------
def rope_pallas(x, base: int = 10000, *, inplace: bool = False):
    B, nh, T, d = x.shape
    assert d % 2 == 0, "The input dimension must be even."
    dtype = x.dtype
    itemsize = jnp.dtype(dtype).itemsize

    cos2, sin2 = _rope_caches(int(T), int(d), int(base))    # f32, (1, T*d)

    G, W = B * nh, T * d
    x2 = x.reshape(G, W)                                    # free row-major view

    # Keep the last (lane) dim a multiple of 128 so stores stay unmasked.
    Wp = W
    if W % 128 != 0:
        Wp = ((W + 127) // 128) * 128
        x2 = jnp.pad(x2, ((0, 0), (0, Wp - W)))
        cos2 = jnp.pad(cos2, ((0, 0), (0, Wp - W)))
        sin2 = jnp.pad(sin2, ((0, 0), (0, Wp - W)))

    row_multiple = 8 * max(1, 4 // itemsize)                # 8 f32 / 16 bf16 / 32 i8
    budget = _vmem_budget_bytes()
    # Live VMEM ~= 2*x_tile + 2*out_tile + 2*2*cache_rows  ->  x tile ~ budget/5.
    x_tile_budget = max(1 << 20, budget // 5)
    gt, wt = _pick_tiles(G, Wp, itemsize, x_tile_budget, row_multiple)

    # Lane-block OUTER, row-block INNER: cos/sin block index is unchanged
    # across consecutive inner steps -> their DMAs are issued once per lane
    # block instead of once per grid step.
    grid = (Wp // wt, G // gt)

    footprint = 4 * gt * wt * itemsize + 4 * wt * 4 + (1 << 20)
    vmem_limit = int(min(max(footprint, 16 << 20), budget))

    out2 = pl.pallas_call(
        rope_kernel,
        out_shape=jax.ShapeDtypeStruct((G, Wp), dtype),
        grid=grid,
        in_specs=[
            pl.BlockSpec((gt, wt), lambda w, g: (g, w)),   # x
            pl.BlockSpec((1, wt), lambda w, g: (0, w)),    # cos (f32)
            pl.BlockSpec((1, wt), lambda w, g: (0, w)),    # +/-sin (f32)
        ],
        out_specs=pl.BlockSpec((gt, wt), lambda w, g: (g, w)),
        compiler_params=pltpu.CompilerParams(
            dimension_semantics=("parallel", "parallel"),
            vmem_limit_bytes=vmem_limit),
        input_output_aliases=({0: 0} if inplace else {}),
    )(x2, cos2, sin2)

    if Wp != W:
        out2 = out2[:, :W]
    return out2.reshape(B, nh, T, d)


# --------------------------------------------------------------------------
# Pure-JAX reference (direct port of the PyTorch forward)
# --------------------------------------------------------------------------
def rope_reference(x, base: int = 10000):
    B, nh, T, d = x.shape
    dtype = x.dtype
    pos = jnp.arange(1, T + 1, dtype=dtype)
    dim = jnp.arange(d // 2, dtype=dtype)
    theta = jnp.asarray(base, dtype) ** (-2.0 * (dim - 1.0) / d)
    pos_theta = pos[:, None] * theta[None, :]
    cos = jnp.concatenate([jnp.cos(pos_theta), jnp.cos(pos_theta)], axis=-1)
    sin = jnp.concatenate([jnp.sin(pos_theta), jnp.sin(pos_theta)], axis=-1)
    x_ = jnp.stack([-x[..., 1::2], x[..., ::2]], axis=-1).reshape(x.shape)
    return x * cos + x_ * sin


if __name__ == "__main__":
    key = jax.random.PRNGKey(0)
    B, nh, T, d = 2, 4, 8, 32
    x = jax.random.normal(key, (B, nh, T, d), dtype=jnp.float32)

    # f32, 128-multiple lane width
    out = rope_pallas(x)
    jax.block_until_ready(out)
    ref = rope_reference(x)
    assert out.shape == x.shape and out.dtype == x.dtype
    assert jnp.allclose(out, ref, atol=1e-5, rtol=1e-5), "f32 mismatch vs reference"

    # bf16 path (f32 compute inside the kernel, bf16 HBM data path)
    xb = x.astype(jnp.bfloat16)
    outb = rope_pallas(xb)
    jax.block_until_ready(outb)
    refb = rope_reference(xb.astype(jnp.float32))
    assert outb.dtype == jnp.bfloat16
    assert jnp.allclose(outb.astype(jnp.float32), refb, atol=3e-2, rtol=3e-2), \
        "bf16 mismatch vs reference"

    # Non-128-multiple T*d fallback (pad/slice path): T=5, d=32 -> W=160
    x_odd = jax.random.normal(key, (B, nh, 5, d), dtype=jnp.float32)
    out_odd = rope_pallas(x_odd)
    jax.block_until_ready(out_odd)
    ref_odd = rope_reference(x_odd)
    assert jnp.allclose(out_odd, ref_odd, atol=1e-5, rtol=1e-5), \
        "padded-width mismatch vs reference"

    print("KERNEL_OK")
</pallas_src>

<mosaic_0001>
module attributes {stable_mosaic.version = 11 : i64} {
  func.func @rope_kernel(%arg0: i32, %arg1: i32, %arg2: memref<8x128xf32, #tpu.memory_space<vmem>>, %arg3: memref<1x128xf32, #tpu.memory_space<vmem>>, %arg4: memref<1x128xf32, #tpu.memory_space<vmem>>, %arg5: memref<8x128xf32, #tpu.memory_space<vmem>>) attributes {dimension_semantics = [#tpu.dimension_semantics<parallel>, #tpu.dimension_semantics<parallel>], iteration_bounds = array<i64: 2, 1>, scalar_prefetch = 0 : i64, scratch_operands = 0 : i64, tpu.core_type = #tpu.core_type<tc>, window_params = [{transform_indices = @transform_0, window_bounds = array<i64: 8, 128>}, {transform_indices = @transform_1, window_bounds = array<i64: 1, 128>}, {transform_indices = @transform_2, window_bounds = array<i64: 1, 128>}, {transform_indices = @transform_3, window_bounds = array<i64: 8, 128>}]} {
    %c0 = arith.constant 0 : index
    %c0_0 = arith.constant 0 : index
    %0 = vector.load %arg2[%c0, %c0_0] : memref<8x128xf32, #tpu.memory_space<vmem>>, vector<8x128xf32>
    %c127_i32 = arith.constant 127 : i32
    %1 = tpu.dynamic_rotate %0 by %c127_i32 dim 1 : vector<8x128xf32>, i32 -> vector<8x128xf32>
    %c1_i32 = arith.constant 1 : i32
    %2 = tpu.dynamic_rotate %0 by %c1_i32 dim 1 : vector<8x128xf32>, i32 -> vector<8x128xf32>
    %3 = tpu.iota {dimensions = array<i32: 1>} : vector<8x128xi32>
    %c1_i32_1 = arith.constant 1 : i32
    %4 = vector.broadcast %c1_i32_1 : i32 to vector<8x128xi32>
    %5 = arith.andi %3, %4 : vector<8x128xi32>
    %c0_i32 = arith.constant 0 : i32
    %6 = vector.broadcast %c0_i32 : i32 to vector<8x128xi32>
    %7 = arith.cmpi eq, %5, %6 : vector<8x128xi32>
    %8 = arith.select %7, %1, %2 : vector<8x128xi1>, vector<8x128xf32>
    %c0_2 = arith.constant 0 : index
    %c0_3 = arith.constant 0 : index
    %9 = vector.load %arg3[%c0_2, %c0_3] : memref<1x128xf32, #tpu.memory_space<vmem>>, vector<1x128xf32>
    %10 = vector.broadcast %9 : vector<1x128xf32> to vector<8x128xf32>
    %11 = arith.mulf %0, %10 : vector<8x128xf32>
    %c0_4 = arith.constant 0 : index
    %c0_5 = arith.constant 0 : index
    %12 = vector.load %arg4[%c0_4, %c0_5] : memref<1x128xf32, #tpu.memory_space<vmem>>, vector<1x128xf32>
    %13 = vector.broadcast %12 : vector<1x128xf32> to vector<8x128xf32>
    %14 = arith.mulf %8, %13 : vector<8x128xf32>
    %15 = arith.addf %11, %14 : vector<8x128xf32>
    %c0_6 = arith.constant 0 : index
    %c0_7 = arith.constant 0 : index
    %16 = vector.load %arg5[%c0_6, %c0_7] : memref<8x128xf32, #tpu.memory_space<vmem>>, vector<8x128xf32>
    tpu.vector_store %arg5[%c0_6, %c0_7], %15 {strides = array<i32>} : memref<8x128xf32, #tpu.memory_space<vmem>>, vector<8x128xf32>,
    return
  }
  func.func @transform_0(%arg0: i32, %arg1: i32) -> (i32, i32) {
    %c0_i32 = arith.constant 0 : i32
    return %arg1, %arg0 : i32, i32
  }
  func.func @transform_1(%arg0: i32, %arg1: i32) -> (i32, i32) {
    %c0_i32 = arith.constant 0 : i32
    %c0_i32_0 = arith.constant 0 : i32
    return %c0_i32, %arg0 : i32, i32
  }
  func.func @transform_2(%arg0: i32, %arg1: i32) -> (i32, i32) {
    %c0_i32 = arith.constant 0 : i32
    %c0_i32_0 = arith.constant 0 : i32
    return %c0_i32, %arg0 : i32, i32
  }
  func.func @transform_3(%arg0: i32, %arg1: i32) -> (i32, i32) {
    %c0_i32 = arith.constant 0 : i32
    return %arg1, %arg0 : i32, i32
  }
}

</mosaic_0001>

<bundles_post_ra>
// kernel: tpu_custom_call.1
= control target key start
LH: loop header
LB: loop body
LE: loop exit
PB: predicated region body
PF: predicated region fallthrough
CT: control target
= control target key end

     0   :  { %8 = vsyncpa [#allocation3], 0  ;;  %s773_s0 = inlined_call_operand.hbm [shape: f32[8,256], index: 0, kind: input, shape index: {}]   ;;  %s774_s1 = inlined_call_operand.vmem [shape: f32[1,256], index: 1, kind: input, shape index: {}]   ;;  %s775_s2 = inlined_call_operand.vmem [shape: f32[1,256], index: 2, kind: input, shape index: {}]   ;;  %s776_s3 = inlined_call_operand.hbm [shape: f32[8,256], index: 3, kind: output, shape index: {}]  }
   0x1   :  { %10 = vsyncpa [#allocation3 + $0x1], 0 }
   0x2   :  { %11 = vsyncpa [#allocation4], 0 }
   0x3   :  { %13 = vsyncpa [#allocation4 + $0x1], 0  ;;  %s593_s12 = smov 0   ;;  %s595_s13 = smov 0  }
   0x4   :  { %s597_s14 = smov 0   ;;  %s599_s15 = smov 0  }
   0x5   :  { %s601_s16 = smov 0   ;;  %s603_s17 = smov 0  }
   0x6 LB: > { %s376_s18 = sadd.s32 4294967295, %s567_s17   ;;  %s377_s19 = sadd.s32 4294967294, %s567_s17   ;;  %s567_s17 = sphi %s603_s17, %s19_s17   ;;  %s563_s16 = sphi %s601_s16, %s792_s16   ;;  %s559_s15 = sphi %s599_s15, %s791_s15   ;;  %s555_s14 = sphi %s597_s14, %s790_s14   ;;  %s551_s13 = sphi %s595_s13, %s789_s13   ;;  %s547_s12 = sphi %s593_s12, %s788_s12  }
   0x7   : > { %s31_s20 = sadd.s32 1, %s563_s16  ;;  %s40_s21 = sadd.s32 1, %s555_s14 }
   0x8   : > { %p33_p0 = scmp.ge.s32.totalorder %s31_s20, 2  ;;  %p47_p1 = scmp.ne.s32.totalorder %s555_s14, %s551_s13 }
   0x9   : > { %p48_p2 = scmp.eq.s32.totalorder %s567_s17, 0  ;;  %p53_p3 = scmp.ne.s32.totalorder %s551_s13, %s547_s12 }
   0xa   : > { %s794_s20 = smov (%p33_p0, %s31_s20), 0  ;;  %p54_p5 = scmp.eq.s32.totalorder %s376_s18, 0 }
   0xb   : > { %p634_p4 = por %p48_p2, %p47_p1  ;;  %s36_s23 = ssub.s32 %s563_s16, %s794_s20 }
   0xc   : > { %p131_p6 = scmp.eq.s32.totalorder %s376_s18, 1  ;;  %p38_p7 = scmp.eq.s32.totalorder %s36_s23, 0 }
   0xd   : > { %p640_p8 = por %p54_p5, %p53_p3  ;;  %p137_p10 = scmp.eq.s32.totalorder %s377_s19, 1 }
   0xe   : > { %p644_p9 = por %p131_p6, %p47_p1  ;;  %p403_p13 = scmp.lt.s32.totalorder %s567_s17, 2 }
   0xf   : > { %s649_s26 = scalar_select %p38_p7, %s555_s14, %s40_s21  }
  0x10   : > { %s780_s25 = scalar_select %p644_p9, 1, 0 }
  0x11   : > { %p651_p11 = por %p137_p10, %p53_p3  ;;  %s157_s28 = sand.u32 1, %s555_s14  }
  0x12   : > { %s380_s29 = sshll.u32 %s157_s28, 3  ;;  %s381_s30 = sshll.u32 %s563_s16, 7 }
  0x13   : > { %s781_s27 = scalar_select %p651_p11, 1, 0 }
  0x14   : > { %s662_s6 = scalar_lea.hbm %s773_s0, %s381_s30  ;;  %s161_s7 = scalar_lea.vmem [#allocation2], %s380_s29 }
  0x15   : > { %s170_s8 = sshll.u32 %s161_s7, 4  ;;  %p668_p0 = pnand %p403_p13, %p634_p4  ;;  %s664_s8 = int_to_ptr.vmem [resolvable:$true] %s170_s8 }
  0x16   : > { %s158_s10 = scalar_lea.sflag [#allocation3], %s157_s28  ;;  %s455_s11 = scalar_lea.hbm %s662_s6, 128 }
  0x17   : > { %p456_p3 = scmp.ne.s32.totalorder %s662_s6, %s455_s11  ;;  %p457_p5 = pneg %p668_p0 }
  0x18   : > { %s460_s21 = scalar_lea.hbm %s773_s0, 256  ;;  %p461_p4 = scmp.lt.u32.totalorder %s662_s6, %s773_s0 }
  0x19   : > { %p458_p6 = pnand %p457_p5, %p456_p3  ;;  %p462_p10 = scmp.lt.u32.totalorder %s460_s21, %s455_s11 }
  0x1a   : > { %p464_p12 = scmp.lt.u32.totalorder %s455_s11, %s662_s6 }
  0x1b   : > { %p459_p7 = pneg %p458_p6  ;;  %p463_p13 = por %p462_p10, %p461_p4 }
  0x1d   : > { %p465_p1 = por %p464_p12, %p463_p13 }
  0x1f   : > { %p466_p2 = pnand %p465_p1, %p459_p7 }
  0x21   : > { %469 = shalt.err (!%p466_p2)
}
  0x22   : > { %s470_s28 = scalar_lea.vmem %s664_s8, 128  ;;  %s569_s29 = smov [#allocation2]  }
  0x23   : > { %p471_p3 = scmp.ne.s32.totalorder %s664_s8, %s470_s28  ;;  %s475_s30 = sshll.u32 %s569_s29, 4  ;;  %s476_s30 = int_to_ptr.vmem [resolvable:$false] %s475_s30 }
  0x24   : > { %s477_s4 = scalar_lea.vmem %s476_s30, 256  ;;  %p478_p9 = scmp.lt.s32.totalorder %s664_s8, %s476_s30 }
  0x25   : > { %p473_p6 = pnand %p471_p3, %p457_p5  ;;  %p479_p4 = scmp.lt.s32.totalorder %s477_s4, %s470_s28 }
  0x27   : > { %p474_p11 = pneg %p473_p6  ;;  %p480_p10 = por %p479_p4, %p478_p9 }
  0x29   : > { %p481_p12 = pnand %p480_p10, %p474_p11 }
  0x2b   : > { %484 = shalt.err (!%p481_p12)
}
  0x2c   : > { %398 = dma.hbm_to_vmem [thread:$0]  (!%p668_p0), %s662_s6, 128, %s664_s8, %s158_s10  }
  0x2d   : > { %p783_p1 = scmp.lt.s32.totalorder %s567_s17, 3  ;;  %p784_p2 = scmp.ge.s32.totalorder %s567_s17, 1 }
  0x2f   : > { %p188_p5 = pnand %p784_p2, %p783_p1 }
  0x30   : > { %s704_s5 = sand.u32 (!%p188_p5), 1, %s551_s13  }
  0x31   : > { %191 = sbr.rel (%p188_p5) target bundleno = 196 (0xc4), region = 32  ;;  %s383_s7 = sshll.u32 (!%p188_p5), %s704_s5, 3 }
  0x32   : > { %s194_s11 = scalar_lea.sflag (!%p188_p5), [#allocation3], %s704_s5  ;;  %s197_s18 = scalar_lea.vmem (!%p188_p5), [#allocation2], %s383_s7 }
  0x38   : > { %538 = dma.done.wait (%p640_p8), %s194_s11, 128  }
  0x39   : > { %540 = vsyncadd (%p640_p8), %s194_s11, 4294967168  ;;  %v232_v0 = vld [vmem:[%s197_s18] sm:$0xff]  ;;  %s570_s6 = smov 127   ;;  %s571_s8 = smov 1   ;;  %v237_v1 = vlaneseq }
  0x3a   : > { %233 = vrot.lane.b32.xlu0 %v232_v0, %s570_s6  ;;  %p226_p9 = scmp.lt.s32.totalorder %s559_s15, 1  ;;  %s388_s28 = sshll.u32 %s559_s15, 7 }
  0x3b   : > { %v238_v2 = vand.u32 127, %v237_v1  ;;  %s225_s29 = scalar_lea.vmem [#allocation5], %s383_s7  ;;  %s724_s18 = scalar_lea.hbm %s776_s3, %s388_s28 }
  0x3c   : > { %s227_s9 = scalar_select %p226_p9, %s559_s15, 1 }
  0x3d   : > { %v239_v3 = vand.u32 1, %v238_v2  ;;  %s276_s30 = sshll.u32 %s225_s29, 4  ;;  %s261_s6 = scalar_lea.sflag [#allocation4], %s704_s5  ;;  %s726_s30 = int_to_ptr.vmem [resolvable:$true] %s276_s30 }
  0x3e   : > { %235 = vrot.lane.b32.xlu0 %v232_v0, %s571_s8  ;;  %s228_s21 = scalar_lea.vmem %s774_s1, %s227_s9  ;;  %s231_s23 = scalar_lea.vmem %s775_s2, %s227_s9 }
  0x3f   : > { %v385_v5 = vld [vmem:[%s228_s21] ss:$0 sm:$0xff]  ;;  %vm240_vm0 = vcmp.eq.s32.totalorder %v239_v3, 0  ;;  %s485_s8 = scalar_lea.vmem %s726_s30, 128  ;;  %p785_p11 = scmp.ne.s32.totalorder %s780_s25, 0 }
  0x40   : > { %v386_v6 = vld [vmem:[%s231_s23] ss:$0 sm:$0xff]  ;;  %v249_v7 = vmul.f32 %v385_v5, %v232_v0  ;;  %p486_p8 = scmp.ne.s32.totalorder %s726_s30, %s485_s8  ;;  %s572_s15 = smov [#allocation5]  }
  0x41   : > { %s489_s7 = sshll.u32 %s572_s15, 4  ;;  %s490_s7 = int_to_ptr.vmem [resolvable:$false] %s489_s7 }
  0x42   : > { %p487_p0 = pnand %p486_p8, %p785_p11  ;;  %s491_s9 = scalar_lea.vmem %s490_s7, 256 }
  0x43   : > { %p492_p13 = scmp.lt.s32.totalorder %s726_s30, %s490_s7  ;;  %p493_p3 = scmp.lt.s32.totalorder %s491_s9, %s485_s8 }
  0x44   : > { %p488_p7 = pneg %p487_p0 }
  0x45   : > { %p494_p6 = por %p493_p3, %p492_p13 }
  0x47   : > { %p495_p4 = pnand %p494_p6, %p488_p7 }
  0xac   : > { %v234_v4 = vpop.permute.xlu0 %233 }
  0xb0   : > { %v236_v8 = vpop.permute.xlu0 %235 }
  0xb1   : > { %v241_v9 = vsel %vm240_vm0, %v234_v4, %v236_v8 }
  0xb2   : > { %v257_v10 = vmul.f32 %v386_v6, %v241_v9 }
  0xb4   : > { %v258_v11 = vadd.f32 %v257_v10, %v249_v7 }
  0xb6   : > { %259 = vst [vmem:[%s225_s29] sm:$0xff] %v258_v11 }
  0xb7   : > { %498 = shalt.err (!%p495_p4)
}
  0xb8   : > { %s499_s5 = scalar_lea.hbm %s724_s18, 128  ;;  %s503_s21 = scalar_lea.hbm %s776_s3, 256 }
  0xb9   : > { %p500_p10 = scmp.ne.s32.totalorder %s724_s18, %s499_s5  ;;  %p504_p2 = scmp.lt.u32.totalorder %s724_s18, %s776_s3 }
  0xba   : > { %p505_p5 = scmp.lt.u32.totalorder %s503_s21, %s499_s5  ;;  %p507_p8 = scmp.lt.u32.totalorder %s499_s5, %s724_s18 }
  0xbb   : > { %p501_p12 = pnand %p500_p10, %p785_p11 }
  0xbc   : > { %p506_p9 = por %p505_p5, %p504_p2 }
  0xbd   : > { %p502_p1 = pneg %p501_p12 }
  0xbe   : > { %p508_p0 = por %p507_p8, %p506_p9 }
  0xc0   : > { %p509_p7 = pnand %p508_p0, %p502_p1 }
  0xc2   : > { %512 = shalt.err (!%p509_p7)
}
  0xc3   : > { %393 = dma.vmem_to_hbm [thread:$0]  (%p785_p11), %s726_s30, 128, %s724_s18, %s261_s6  }
  0xc4 PF: > { %s288_s23 = sand.u32 1, %s547_s12   ;;  %p786_p13 = scmp.ne.s32.totalorder %s781_s27, 0 }
  0xc5   : > { %p787_p3 = scmp.ge.s32.totalorder %s567_s17, 2  ;;  %s289_s28 = scalar_lea.sflag [#allocation4], %s288_s23 }
  0xc7   : > { %p400_p6 = pnand %p787_p3, %p786_p13 }
  0xc9   : > { %542 = dma.done.wait (!%p400_p6), %s289_s28, 128  }
  0xca   : > { %544 = vsyncadd (!%p400_p6), %s289_s28, 4294967168  ;;  %s19_s17 = sadd.s32 1, %s567_s17   ;;  %s788_s12 = smov %s551_s13 }
  0xcb   : > { %p16_p4 = scmp.ge.s32.totalorder %s19_s17, 4   ;;  %s789_s13 = smov %s555_s14 }
  0xcc   : > { %s790_s14 = smov %s649_s26  ;;  %s791_s15 = smov %s563_s16 }
  0xcd   : > { %s792_s16 = smov %s794_s20  ;;  %18 = sbr.rel (!%p16_p4) target bundleno = 6 (0x6), region = 83 }
  0xd4   :  { %294 = vsyncpa [#allocation3], 1 }
  0xd5   :  { %296 = vsyncpa [#allocation3 + $0x1], 1 }
  0xd6   :  { %297 = vsyncpa [#allocation4], 1 }
  0xd7   :  { %299 = vsyncpa [#allocation4 + $0x1], 1 }

</bundles_post_ra>
